<compile_context>
chip_gen: v7x
topology: tpu7x:2x2x1
jax: 0.10.0
libtpu: 0.0.40
codegen_flags: <defaults>
</compile_context>

<pallas_src>
import jax
import jax.numpy as jnp
from jax.experimental import pallas as pl
from jax.experimental.pallas import tpu as pltpu


def mlp_kernel(x_ref, w1_ref, b1_ref, w2_ref, b2_ref, o_ref):
    # ---- layer1 + ReLU --------------------------------------------------
    # Feed the native dtype straight to the MXU; accumulate in f32.
    h = jnp.dot(x_ref[...], w1_ref[...], preferred_element_type=jnp.float32)
    h = jnp.maximum(h + b1_ref[...], 0.0)          # bias broadcast (1, H)

    # ---- dropout ---------------------------------------------------------
    # Inference semantics: nn.Dropout is the identity in eval mode.
    # TODO(synk): training-mode dropout (pltpu.prng_seed + prng_random_bits mask
    #             scaled by 1/(1-p)) not wired in.

    # ---- layer2 -----------------------------------------------------------
    logits = jnp.dot(h, w2_ref[...], preferred_element_type=jnp.float32)
    logits = logits + b2_ref[...]                  # (B, D_out)

    # ---- log_softmax over last dim (output_dim != 1 branch) ---------------
    # max/sum over the width-2 last dim go to the XLU and exp/log to the EUP —
    # separate VLIW slots from the VALU, so this is effectively free filler.
    m = jnp.max(logits, axis=-1, keepdims=True)
    shifted = logits - m
    lse = jnp.log(jnp.sum(jnp.exp(shifted), axis=-1, keepdims=True))
    # NOTE: Dout=2 => narrow (2-lane) stores; only matters at very large B, in
    # which case a wrapper-side lane-dense repack would be the next lever.
    o_ref[...] = (shifted - lse).astype(o_ref.dtype)


def mlp_forward(x, w1, b1, w2, b2, *, batch_tile=256):
    B, Din = x.shape
    H = w1.shape[1]
    Dout = w2.shape[1]
    out_dtype = jnp.float32

    # Advisory cost hint for XLA's scheduler.
    cost = pl.CostEstimate(
        flops=2 * B * (Din * H + H * Dout),
        transcendentals=B * (Dout + 1),                    # exp per logit + log per row
        bytes_accessed=4 * (B * Din + Din * H + H + H * Dout + Dout + B * Dout),
    )

    if B >= 2 * batch_tile and B % batch_tile == 0:
        # Large-batch path: tile the batch axis; weights/biases stay resident.
        # "parallel" lets v7x's 2 TensorCores split the grid (no-op on v5e/v6e).
        return pl.pallas_call(
            mlp_kernel,
            out_shape=jax.ShapeDtypeStruct((B, Dout), out_dtype),
            grid=(B // batch_tile,),
            in_specs=[
                pl.BlockSpec((batch_tile, Din), lambda i: (i, 0)),
                pl.BlockSpec((Din, H), lambda i: (0, 0)),
                pl.BlockSpec((1, H), lambda i: (0, 0)),
                pl.BlockSpec((H, Dout), lambda i: (0, 0)),
                pl.BlockSpec((1, Dout), lambda i: (0, 0)),
            ],
            out_specs=pl.BlockSpec((batch_tile, Dout), lambda i: (i, 0)),
            compiler_params=pltpu.CompilerParams(
                dimension_semantics=("parallel",)),
            cost_estimate=cost,
        )(x, w1, b1, w2, b2)

    # Small-batch path: no grid, no software pipeline — whole arrays are placed
    # directly in VMEM for one kernel invocation.
    vmem_spec = pl.BlockSpec(memory_space=pltpu.MemorySpace.VMEM)
    return pl.pallas_call(
        mlp_kernel,
        out_shape=jax.ShapeDtypeStruct((B, Dout), out_dtype),
        in_specs=[vmem_spec] * 5,
        out_specs=vmem_spec,
        cost_estimate=cost,
    )(x, w1, b1, w2, b2)


def _reference(x, w1, b1, w2, b2):
    h = jnp.maximum(x @ w1 + b1, 0.0)
    logits = h @ w2 + b2
    return jax.nn.log_softmax(logits, axis=-1)


if __name__ == "__main__":
    input_dim, hidden_dim, output_dim = 8, 32, 2

    key = jax.random.PRNGKey(0)
    kx, kw1, kb1, kw2, kb2, kxl = jax.random.split(key, 6)

    # Deterministic synthetic parameters (shapes match nn.Linear(in, out), transposed).
    w1 = jax.random.normal(kw1, (input_dim, hidden_dim), dtype=jnp.float32) * 0.1
    b1 = jax.random.normal(kb1, (1, hidden_dim), dtype=jnp.float32) * 0.1
    w2 = jax.random.normal(kw2, (hidden_dim, output_dim), dtype=jnp.float32) * 0.1
    b2 = jax.random.normal(kb2, (1, output_dim), dtype=jnp.float32) * 0.1

    # --- small batch: no-grid single-invocation path ---
    x_small = jax.random.normal(kx, (8, input_dim), dtype=jnp.float32)
    out_small = jax.block_until_ready(mlp_forward(x_small, w1, b1, w2, b2))
    ref_small = _reference(x_small, w1, b1, w2, b2)
    assert jnp.allclose(out_small, ref_small, atol=1e-5), "small-batch mismatch vs reference"

    # --- large batch: batch-tiled 'parallel' grid path ---
    x_large = jax.random.normal(kxl, (512, input_dim), dtype=jnp.float32)
    out_large = jax.block_until_ready(mlp_forward(x_large, w1, b1, w2, b2))
    ref_large = _reference(x_large, w1, b1, w2, b2)
    assert jnp.allclose(out_large, ref_large, atol=1e-5), "large-batch mismatch vs reference"

    print("KERNEL_OK")
</pallas_src>

<mosaic_0001>
module attributes {stable_mosaic.version = 11 : i64} {
  func.func @mlp_kernel(%arg0: memref<8x8xf32, #tpu.memory_space<vmem>>, %arg1: memref<8x32xf32, #tpu.memory_space<vmem>>, %arg2: memref<1x32xf32, #tpu.memory_space<vmem>>, %arg3: memref<32x2xf32, #tpu.memory_space<vmem>>, %arg4: memref<1x2xf32, #tpu.memory_space<vmem>>, %arg5: memref<8x2xf32, #tpu.memory_space<vmem>>) attributes {dimension_semantics = [], scalar_prefetch = 0 : i64, scratch_operands = 0 : i64, tpu.core_type = #tpu.core_type<tc>} {
    %c0 = arith.constant 0 : index
    %c0_0 = arith.constant 0 : index
    %0 = vector.load %arg0[%c0, %c0_0] : memref<8x8xf32, #tpu.memory_space<vmem>>, vector<8x8xf32>
    %c0_1 = arith.constant 0 : index
    %c0_2 = arith.constant 0 : index
    %1 = vector.load %arg1[%c0_1, %c0_2] : memref<8x32xf32, #tpu.memory_space<vmem>>, vector<8x32xf32>
    %cst = arith.constant dense<0.000000e+00> : vector<8x32xf32>
    %2 = tpu.matmul %0, %1, %cst {dimension_numbers = #tpu.dot_dimension_numbers<[1], [0], [0], [1], [0, 0, 1, 1], [], []>} : vector<8x8xf32>, vector<8x32xf32>, vector<8x32xf32> -> vector<8x32xf32>
    %c0_3 = arith.constant 0 : index
    %c0_4 = arith.constant 0 : index
    %3 = vector.load %arg2[%c0_3, %c0_4] : memref<1x32xf32, #tpu.memory_space<vmem>>, vector<1x32xf32>
    %4 = vector.broadcast %3 : vector<1x32xf32> to vector<8x32xf32>
    %5 = arith.addf %2, %4 : vector<8x32xf32>
    %cst_5 = arith.constant 0.000000e+00 : f32
    %6 = vector.broadcast %cst_5 : f32 to vector<8x32xf32>
    %7 = arith.maximumf %5, %6 : vector<8x32xf32>
    %c0_6 = arith.constant 0 : index
    %c0_7 = arith.constant 0 : index
    %8 = vector.load %arg3[%c0_6, %c0_7] : memref<32x2xf32, #tpu.memory_space<vmem>>, vector<32x2xf32>
    %cst_8 = arith.constant dense<0.000000e+00> : vector<8x2xf32>
    %9 = tpu.matmul %7, %8, %cst_8 {dimension_numbers = #tpu.dot_dimension_numbers<[1], [0], [0], [1], [0, 0, 1, 1], [], []>} : vector<8x32xf32>, vector<32x2xf32>, vector<8x2xf32> -> vector<8x2xf32>
    %c0_9 = arith.constant 0 : index
    %c0_10 = arith.constant 0 : index
    %10 = vector.load %arg4[%c0_9, %c0_10] : memref<1x2xf32, #tpu.memory_space<vmem>>, vector<1x2xf32>
    %11 = vector.broadcast %10 : vector<1x2xf32> to vector<8x2xf32>
    %12 = arith.addf %9, %11 : vector<8x2xf32>
    %cst_11 = arith.constant dense<0xFF800000> : vector<8xf32>
    %13 = vector.multi_reduction <maximumf>, %12, %cst_11 [1] : vector<8x2xf32> to vector<8xf32>
    %14 = vector.shape_cast %13 : vector<8xf32> to vector<8x1xf32>
    %15 = vector.broadcast %14 : vector<8x1xf32> to vector<8x2xf32>
    %16 = arith.subf %12, %15 : vector<8x2xf32>
    %17 = math.exp %16 : vector<8x2xf32>
    %cst_12 = arith.constant dense<0.000000e+00> : vector<8xf32>
    %18 = vector.multi_reduction <add>, %17, %cst_12 [1] : vector<8x2xf32> to vector<8xf32>
    %19 = vector.shape_cast %18 : vector<8xf32> to vector<8x1xf32>
    %20 = math.log %19 : vector<8x1xf32>
    %21 = vector.broadcast %20 : vector<8x1xf32> to vector<8x2xf32>
    %22 = arith.subf %16, %21 : vector<8x2xf32>
    %c0_13 = arith.constant 0 : index
    %c0_14 = arith.constant 0 : index
    %23 = vector.load %arg5[%c0_13, %c0_14] : memref<8x2xf32, #tpu.memory_space<vmem>>, vector<8x2xf32>
    tpu.vector_store %arg5[%c0_13, %c0_14], %22 {strides = array<i32>} : memref<8x2xf32, #tpu.memory_space<vmem>>, vector<8x2xf32>,
    return
  }
}

</mosaic_0001>

<bundles_post_ra>
// kernel: tpu_custom_call.1
= control target key start
LH: loop header
LB: loop body
LE: loop exit
PB: predicated region body
PF: predicated region fallthrough
CT: control target
= control target key end

     0   :  { %vm29_vm0 = vcmask 64512   ;;  %v247_v0 = vmov 0.0   ;;  %vm248_vm1 = vmmov 0   ;;  %v249_v4 = vmov 0.0|0.0   ;;  %s310_s1 = inlined_call_operand.vmem [shape: f32[8,32], index: 1, kind: input, shape index: {}]   ;;  %s311_s0 = inlined_call_operand.vmem [shape: f32[8,8], index: 0, kind: input, shape index: {}]   ;;  %s312_s3 = inlined_call_operand.vmem [shape: f32[32,2], index: 3, kind: input, shape index: {}]   ;;  %s313_s2 = inlined_call_operand.vmem [shape: f32[1,32], index: 2, kind: input, shape index: {}]   ;;  %s314_s4 = inlined_call_operand.vmem [shape: f32[1,2], index: 4, kind: input, shape index: {}]   ;;  %s315_s5 = inlined_call_operand.vmem [shape: f32[8,2], index: 5, kind: output, shape index: {}]  }
   0x1   :  { %218 = vmatprep.subr.mxu0 %v247_v0  ;;  %v21_v1 = vld [vmem:[%s310_s1] sm:$0xff]  ;;  %220 = vmatprep.mubr.msk.f32.mxu0 %vm248_vm1, %v247_v0  ;;  %v105_v5 = vld [vmem:[%s312_s3 + $0x8] sm:$0xff]  ;;  %v106_v7 = vld [vmem:[%s312_s3 + $0x10] sm:$0xff]  ;;  %vm115_vm2 = vcmask 261120   ;;  %vm189_vm3 = vcmask 15360  }
   0x2   :  { %v20_v2 = vld [vmem:[%s311_s0] sm:$0xff]  ;;  %219 = vmatpush3.msra.mxu0 %v21_v1  ;;  %234 = vmatprep.subr.bf16.mxu1 %v249_v4  ;;  %v107_v8 = vld [vmem:[%s312_s3 + $0x18] sm:$0xff] }
   0x3   :  { %v104_v3 = vld [vmem:[%s312_s3] sm:$0xff]  ;;  %221 = vmatmul.mubr.msk.f32.vlgmr.msra.gmra.mrb[0].mxu0 %vm29_vm0, %v20_v2  ;;  %231 = vmatprep.mubr.msk.f32.mxu1 %vm248_vm1, %v247_v0  ;;  %v238_v9 = vpack.c.bf16 %v107_v8, %v106_v7 }
   0x4   :  { %v235_v6 = vpack.c.bf16 %v105_v5, %v104_v3  ;;  %v207_v10 = vld [vmem:[%s313_s2] ss:$0 sm:$0xff] }
   0x5   :  { %v209_v15 = vld [vmem:[%s314_s4] ss:$0 sm:$0xff] }
   0x6   :  { %236 = vmatpush3.bf16.msra.mxu1 %v235_v6 }
   0x7   :  { %237 = vmatprep.subr.bf16.mxu1 %v249_v4 }
   0xa   :  { %239 = vmatpush3.bf16.msra.mxu1 %v238_v9 }
  0xd6   :  { %v99_v11 = vpop.f32.mrb[0].mxu0 }
  0xd7   :  { %v100_v12 = vadd.f32 %v207_v10, %v99_v11  ;;  %v222_v13 = vpop.f32.mrb[1].mxu0 }
  0xd9   :  { %v103_v14 = vmax.f32 %v100_v12, 0.0 }
  0xdb   :  { %232 = vmatmul.mubr.msk.f32.vlgmr.msra.gmra.mrb[0].mxu1 %vm115_vm2, %v103_v14 }
 0x1ae   :  { %v185_v16 = vpop.f32.mrb[0].mxu1 }
 0x1af   :  { %v186_v17 = vadd.f32 %v209_v15, %v185_v16  ;;  %v233_v18 = vpop.f32.mrb[1].mxu1 }
 0x1b1   :  { %v190_v19 = vsel %vm189_vm3, %v186_v17, -inf }
 0x1b2   :  { %191 = vmax.xlane.f32.xlu0 %v190_v19 }
 0x23f   :  { %v192_v20 = vpop.xlane.xlu0 %191 }
 0x240   :  { %v193_v21 = vsub.f32 %v186_v17, %v192_v20 }
 0x242   :  { %v194_v22 = vmul.f32 1.442695, %v193_v21 }
 0x244   :  { %243 = vpow2.f32 %v194_v22 }
 0x24e   :  { %v244_v23 = vpop.eup %243 }
 0x24f   :  { %v196_v24 = vsel %vm189_vm3, %v244_v23, 0.0 }
 0x250   :  { %197 = vadd.xlane.f32.xlu0 %v196_v24 }
 0x2dd   :  { %v198_v25 = vpop.xlane.xlu0 %197 }
 0x2de   :  { %245 = vlog2.f32 %v198_v25 }
 0x2e8   :  { %v246_v26 = vpop.eup %245 }
 0x2e9   :  { %v200_v27 = vmul.f32 0.6931472, %v246_v26 }
 0x2eb   :  { %v201_v28 = vsub.f32 %v193_v21, %v200_v27 }
 0x2ed   :  { %202 = vst.msk [vmem:[%s315_s5] sm:$0xff] %vm189_vm3, %v201_v28 }

</bundles_post_ra>
